<compile_context>
chip_gen: v5e
topology: v5e:2x2
jax: 0.10.0
libtpu: 0.0.40
codegen_flags: <defaults>
</compile_context>

<pallas_src>
import jax
import jax.numpy as jnp
from jax import lax
from jax.experimental import pallas as pl
from jax.experimental.pallas import tpu as pltpu

# dot_general dimension numbers for A @ B^T (same pattern as flash-attention q@k^T)
_TRANS_B_DN = (((1,), (1,)), ((), ()))


def _discriminator_kernel(x_ref, a_ref, w1x_ref, w1a_ref, b1_ref, w3_ref,
                          b3_ref, o_ref):
    # x_ref:  (TB, S)   a_ref: (TB, A)     -- batch tile (rows of the batch)
    # w1x_ref:(H, S)    w1a_ref:(H, A)     -- PyTorch-layout slices of fc1.weight
    # b1_ref: (H, 1)    w3_ref:(1, H)      -- VMEM-resident
    # b3_ref: (1, 1) in SMEM               -- scalar bias
    # o_ref:  (1, TB)                      -- lane-dense output row
    # fc1 on the MXU with batch on the lane axis: (H,S)·(TB,S)^T -> (H,TB)
    hT = jnp.tanh(
        lax.dot_general(w1x_ref[...], x_ref[...], _TRANS_B_DN,
                        preferred_element_type=jnp.float32)
        + lax.dot_general(w1a_ref[...], a_ref[...], _TRANS_B_DN,
                          preferred_element_type=jnp.float32)
        + b1_ref[...]
    )                                                        # (H, TB)
    # fc3: (1,H)·(H,TB) -> (1,TB); bias comes from the SMEM scalar.
    logit = jnp.dot(w3_ref[...], hT,
                    preferred_element_type=jnp.float32) + b3_ref[0, 0]
    o_ref[...] = jax.nn.sigmoid(logit)


def prepare_params(w1, b1, w3, b3, state_dim):
    """One-time parameter prep (kept out of the per-call hot path)."""
    w1 = jnp.asarray(w1, jnp.float32)
    w1x = w1[:, :state_dim]                               # (H, S)
    w1a = w1[:, state_dim:]                               # (H, A)
    b1c = jnp.asarray(b1, jnp.float32).reshape(-1, 1)     # (H, 1) lane-broadcast
    w3r = jnp.asarray(w3, jnp.float32).reshape(1, -1)     # (1, H)
    b3s = jnp.asarray(b3, jnp.float32).reshape(1, 1)      # (1, 1) -> SMEM scalar
    return w1x, w1a, b1c, w3r, b3s


def discriminator_forward(x, a, params, *, block_b=1024):
    """x: [B, S], a: [B, A]; params from prepare_params(). Returns [B, 1] f32."""
    w1x, w1a, b1c, w3r, b3s = params
    B, S = x.shape
    A = a.shape[1]
    H = w1x.shape[0]

    tb = min(block_b, B)
    nb = pl.cdiv(B, tb)
    Bp = nb * tb
    if Bp != B:  # pad batch up to a whole number of tiles; sliced off below
        x = jnp.pad(x, ((0, Bp - B), (0, 0)))
        a = jnp.pad(a, ((0, Bp - B), (0, 0)))

    grid_spec = pltpu.PrefetchScalarGridSpec(
        num_scalar_prefetch=0,
        grid=(nb,),
        in_specs=[
            pl.BlockSpec((tb, S), lambda i: (i, 0)),             # x batch tile
            pl.BlockSpec((tb, A), lambda i: (i, 0)),             # a batch tile
            pl.BlockSpec((H, S), lambda i: (0, 0)),              # W1[:, :S] resident
            pl.BlockSpec((H, A), lambda i: (0, 0)),              # W1[:, S:] resident
            pl.BlockSpec((H, 1), lambda i: (0, 0)),              # b1 column resident
            pl.BlockSpec((1, H), lambda i: (0, 0)),              # W3 row resident
            pl.BlockSpec(memory_space=pltpu.MemorySpace.SMEM),   # b3 scalar
        ],
        out_specs=pl.BlockSpec((1, tb), lambda i: (0, i)),       # lane-dense row
    )

    out_row = pl.pallas_call(
        _discriminator_kernel,
        out_shape=jax.ShapeDtypeStruct((1, Bp), jnp.float32),
        grid_spec=grid_spec,
        compiler_params=pltpu.CompilerParams(
            dimension_semantics=("parallel",)),
    )(x, a, w1x, w1a, b1c, w3r, b3s)

    return out_row.reshape(Bp, 1)[:B]


def _reference_forward(x, a, w1, b1, w3, b3):
    cat = jnp.concatenate([x, a], axis=1)
    h = jnp.tanh(cat @ w1.T + b1)
    return jax.nn.sigmoid(h @ w3.T + b3)


if __name__ == "__main__":
    # Small shapes consistent with the module's forward.
    batch = 8
    state_dim = 12
    action_dim = 4
    hidden_dim = 32

    key = jax.random.PRNGKey(0)
    kx, ka, kw1, kb1, kw3, kb3, kx2, ka2 = jax.random.split(key, 8)

    x = jax.random.normal(kx, (batch, state_dim), dtype=jnp.float32)
    a = jax.random.normal(ka, (batch, action_dim), dtype=jnp.float32)

    # Deterministic parameter init mirroring __init__:
    # weights ~ Normal(0, 0.1); biases -> small uniform.
    w1 = 0.1 * jax.random.normal(kw1, (hidden_dim, state_dim + action_dim), jnp.float32)
    b1 = 0.05 * jax.random.uniform(kb1, (hidden_dim,), jnp.float32, -1.0, 1.0)
    w3 = 0.1 * jax.random.normal(kw3, (1, hidden_dim), jnp.float32)
    b3 = 0.05 * jax.random.uniform(kb3, (1,), jnp.float32, -1.0, 1.0)

    params = prepare_params(w1, b1, w3, b3, state_dim)

    # 1) Small batch: single grid step (tb == B).
    out = jax.block_until_ready(discriminator_forward(x, a, params))
    ref = _reference_forward(x, a, w1, b1, w3, b3)
    assert out.shape == (batch, 1)
    assert jnp.allclose(out, ref, atol=1e-5, rtol=1e-5), "mismatch vs reference (small batch)"

    # 2) Larger, non-divisible batch: exercises the multi-step grid + padding path.
    batch2 = 300
    x2 = jax.random.normal(kx2, (batch2, state_dim), dtype=jnp.float32)
    a2 = jax.random.normal(ka2, (batch2, action_dim), dtype=jnp.float32)
    out2 = jax.block_until_ready(discriminator_forward(x2, a2, params, block_b=128))
    ref2 = _reference_forward(x2, a2, w1, b1, w3, b3)
    assert out2.shape == (batch2, 1)
    assert jnp.allclose(out2, ref2, atol=1e-5, rtol=1e-5), "mismatch vs reference (tiled batch)"

    print("KERNEL_OK")
</pallas_src>

<mosaic_0001>
module attributes {stable_mosaic.version = 11 : i64} {
  func.func @_discriminator_kernel(%arg0: i32, %arg1: memref<8x12xf32, #tpu.memory_space<vmem>>, %arg2: memref<8x4xf32, #tpu.memory_space<vmem>>, %arg3: memref<32x12xf32, #tpu.memory_space<vmem>>, %arg4: memref<32x4xf32, #tpu.memory_space<vmem>>, %arg5: memref<32x1xf32, #tpu.memory_space<vmem>>, %arg6: memref<1x32xf32, #tpu.memory_space<vmem>>, %arg7: memref<1x1xf32, #tpu.memory_space<smem>>, %arg8: memref<1x8xf32, #tpu.memory_space<vmem>>) attributes {dimension_semantics = [#tpu.dimension_semantics<parallel>], iteration_bounds = array<i64: 1>, scalar_prefetch = 0 : i64, scratch_operands = 0 : i64, tpu.core_type = #tpu.core_type<tc>, window_params = [{transform_indices = @transform_0, window_bounds = array<i64: 8, 12>}, {transform_indices = @transform_1, window_bounds = array<i64: 8, 4>}, {pipeline_mode = #tpu.pipeline_mode<synchronous>, transform_indices = @transform_2, window_bounds = array<i64: 32, 12>}, {pipeline_mode = #tpu.pipeline_mode<synchronous>, transform_indices = @transform_3, window_bounds = array<i64: 32, 4>}, {pipeline_mode = #tpu.pipeline_mode<synchronous>, transform_indices = @transform_4, window_bounds = array<i64: 32, 1>}, {pipeline_mode = #tpu.pipeline_mode<synchronous>, transform_indices = @transform_5, window_bounds = array<i64: 1, 32>}, {transform_indices = @transform_6, window_bounds = array<i64: 1, 1>}, {transform_indices = @transform_7, window_bounds = array<i64: 1, 8>}]} {
    %c0 = arith.constant 0 : index
    %c0_0 = arith.constant 0 : index
    %0 = vector.load %arg3[%c0, %c0_0] : memref<32x12xf32, #tpu.memory_space<vmem>>, vector<32x12xf32>
    %c0_1 = arith.constant 0 : index
    %c0_2 = arith.constant 0 : index
    %1 = vector.load %arg1[%c0_1, %c0_2] : memref<8x12xf32, #tpu.memory_space<vmem>>, vector<8x12xf32>
    %cst = arith.constant dense<0.000000e+00> : vector<32x8xf32>
    %2 = tpu.matmul %0, %1, %cst {dimension_numbers = #tpu.dot_dimension_numbers<[1], [1], [0], [0], [0, 0, 1, 0], [], []>} : vector<32x12xf32>, vector<8x12xf32>, vector<32x8xf32> -> vector<32x8xf32>
    %c0_3 = arith.constant 0 : index
    %c0_4 = arith.constant 0 : index
    %3 = vector.load %arg4[%c0_3, %c0_4] : memref<32x4xf32, #tpu.memory_space<vmem>>, vector<32x4xf32>
    %c0_5 = arith.constant 0 : index
    %c0_6 = arith.constant 0 : index
    %4 = vector.load %arg2[%c0_5, %c0_6] : memref<8x4xf32, #tpu.memory_space<vmem>>, vector<8x4xf32>
    %cst_7 = arith.constant dense<0.000000e+00> : vector<32x8xf32>
    %5 = tpu.matmul %3, %4, %cst_7 {dimension_numbers = #tpu.dot_dimension_numbers<[1], [1], [0], [0], [0, 0, 1, 0], [], []>} : vector<32x4xf32>, vector<8x4xf32>, vector<32x8xf32> -> vector<32x8xf32>
    %6 = arith.addf %2, %5 : vector<32x8xf32>
    %c0_8 = arith.constant 0 : index
    %c0_9 = arith.constant 0 : index
    %7 = vector.load %arg5[%c0_8, %c0_9] : memref<32x1xf32, #tpu.memory_space<vmem>>, vector<32x1xf32>
    %8 = vector.broadcast %7 : vector<32x1xf32> to vector<32x8xf32>
    %9 = arith.addf %6, %8 : vector<32x8xf32>
    %10 = math.tanh %9 : vector<32x8xf32>
    %c0_10 = arith.constant 0 : index
    %c0_11 = arith.constant 0 : index
    %11 = vector.load %arg6[%c0_10, %c0_11] : memref<1x32xf32, #tpu.memory_space<vmem>>, vector<1x32xf32>
    %cst_12 = arith.constant dense<0.000000e+00> : vector<1x8xf32>
    %12 = tpu.matmul %11, %10, %cst_12 {dimension_numbers = #tpu.dot_dimension_numbers<[1], [0], [0], [1], [0, 0, 1, 1], [], []>} : vector<1x32xf32>, vector<32x8xf32>, vector<1x8xf32> -> vector<1x8xf32>
    %c0_13 = arith.constant 0 : index
    %c0_14 = arith.constant 0 : index
    %13 = memref.load %arg7[%c0_13, %c0_14] : memref<1x1xf32, #tpu.memory_space<smem>>
    %14 = vector.broadcast %13 : f32 to vector<1x8xf32>
    %15 = arith.addf %12, %14 : vector<1x8xf32>
    %16 = arith.negf %15 : vector<1x8xf32>
    %17 = math.exp %16 : vector<1x8xf32>
    %cst_15 = arith.constant 1.000000e+00 : f32
    %18 = vector.broadcast %cst_15 : f32 to vector<1x8xf32>
    %19 = arith.addf %18, %17 : vector<1x8xf32>
    %20 = arith.divf %18, %19 : vector<1x8xf32>
    %c0_16 = arith.constant 0 : index
    %c0_17 = arith.constant 0 : index
    %21 = vector.load %arg8[%c0_16, %c0_17] : memref<1x8xf32, #tpu.memory_space<vmem>>, vector<1x8xf32>
    tpu.vector_store %arg8[%c0_16, %c0_17], %20 {strides = array<i32>} : memref<1x8xf32, #tpu.memory_space<vmem>>, vector<1x8xf32>,
    return
  }
  func.func @transform_0(%arg0: i32) -> (i32, i32) {
    %c0_i32 = arith.constant 0 : i32
    %c0_i32_0 = arith.constant 0 : i32
    return %arg0, %c0_i32 : i32, i32
  }
  func.func @transform_1(%arg0: i32) -> (i32, i32) {
    %c0_i32 = arith.constant 0 : i32
    %c0_i32_0 = arith.constant 0 : i32
    return %arg0, %c0_i32 : i32, i32
  }
  func.func @transform_2(%arg0: i32) -> (i32, i32) {
    %c0_i32 = arith.constant 0 : i32
    %c0_i32_0 = arith.constant 0 : i32
    %c0_i32_1 = arith.constant 0 : i32
    return %c0_i32, %c0_i32_0 : i32, i32
  }
  func.func @transform_3(%arg0: i32) -> (i32, i32) {
    %c0_i32 = arith.constant 0 : i32
    %c0_i32_0 = arith.constant 0 : i32
    %c0_i32_1 = arith.constant 0 : i32
    return %c0_i32, %c0_i32_0 : i32, i32
  }
  func.func @transform_4(%arg0: i32) -> (i32, i32) {
    %c0_i32 = arith.constant 0 : i32
    %c0_i32_0 = arith.constant 0 : i32
    %c0_i32_1 = arith.constant 0 : i32
    return %c0_i32, %c0_i32_0 : i32, i32
  }
  func.func @transform_5(%arg0: i32) -> (i32, i32) {
    %c0_i32 = arith.constant 0 : i32
    %c0_i32_0 = arith.constant 0 : i32
    %c0_i32_1 = arith.constant 0 : i32
    return %c0_i32, %c0_i32_0 : i32, i32
  }
  func.func @transform_6(%arg0: i32) -> (i32, i32) {
    %c0_i32 = arith.constant 0 : i32
    %c0_i32_0 = arith.constant 0 : i32
    %c0_i32_1 = arith.constant 0 : i32
    return %c0_i32, %c0_i32_0 : i32, i32
  }
  func.func @transform_7(%arg0: i32) -> (i32, i32) {
    %c0_i32 = arith.constant 0 : i32
    %c0_i32_0 = arith.constant 0 : i32
    return %c0_i32, %arg0 : i32, i32
  }
}

</mosaic_0001>

<bundles_post_ra>
// kernel: tpu_custom_call.1
= control target key start
LH: loop header
LB: loop body
LE: loop exit
PB: predicated region body
PF: predicated region fallthrough
CT: control target
= control target key end

     0   :  { %vm38_vm0 = vcmask 31744   ;;  %vm83_vm1 = vcmask 97280   ;;  %v280_v5 = vmov 0   ;;  %s385_s0 = inlined_call_operand.vmem [shape: f32[8,12], index: 0, kind: input, shape index: {}]   ;;  %s386_s1 = inlined_call_operand.vmem [shape: f32[8,4], index: 1, kind: input, shape index: {}]   ;;  %s387_s2 = inlined_call_operand.vmem [shape: f32[32,12], index: 2, kind: input, shape index: {}]   ;;  %s388_s3 = inlined_call_operand.vmem [shape: f32[32,4], index: 3, kind: input, shape index: {}]   ;;  %s389_s4 = inlined_call_operand.vmem [shape: f32[32,1], index: 4, kind: input, shape index: {}]   ;;  %s390_s5 = inlined_call_operand.vmem [shape: f32[1,32], index: 5, kind: input, shape index: {}]   ;;  %s391_s6 = inlined_call_operand.<no memory space> [shape: f32[1,1], index: 6, kind: input, shape index: {}]   ;;  %s392_s7 = inlined_call_operand.hbm [shape: f32[1,8], index: 7, kind: output, shape index: {}]  }
   0x1   :  { %v37_v0 = vld [vmem:[%s386_s1] sm:$0xff]  ;;  %v34_v2 = vld [vmem:[%s388_s3 + $0x8] sm:$0xff]  ;;  %241 = vset.pattern.permute.xlu1 %v280_v5  ;;  %v131_v6 = vld [vmem:[%s389_s4 + $0x18] sm:$0xff]  ;;  %240 = vset.pattern.permute.xlu0 %v280_v5 }
   0x2   :  { %v32_v1 = vld [vmem:[%s385_s0] sm:$0xff]  ;;  %236 = vmatpush.xpose.msk.msra.mxu3 %vm38_vm0, %v37_v0  ;;  %v29_v3 = vld [vmem:[%s387_s2 + $0x8] sm:$0xff]  ;;  %224 = vmatpush.xpose.msk.msra.mxu0 %vm38_vm0, %v37_v0 }
   0x3   :  { %237 = vmatpush.xpose.msk.msra.mxu1 %vm83_vm1, %v32_v1  ;;  %v33_v4 = vld [vmem:[%s388_s3] sm:$0xff]  ;;  %v129_v7 = vld [vmem:[%s389_s4 + $0x8] sm:$0xff] }
   0x5   :  { %226 = vmatmul.msk.f32.vlgmr.msra.gmra.mxu3 %vm38_vm0, %v34_v2 }
   0x6   :  { %229 = vmatpush.xpose.msk.msrb.mxu0 %vm83_vm1, %v32_v1  ;;  %231 = vmatmul.msk.f32.vlgmr.msra.gmra.mxu1 %vm83_vm1, %v29_v3 }
   0x7   :  { %13 = vsyncpa [#allocation4], 0  ;;  %225 = vmatmul.msk.f32.vlgmr.msra.gmra.mxu0 %vm38_vm0, %v33_v4  ;;  %149 = vperm.xlu0 %240, %v131_v6   ;;  %v35_v8 = vld [vmem:[%s388_s3 + $0x10] sm:$0xff]  ;;  %v28_v10 = vld [vmem:[%s387_s2] sm:$0xff]  ;;  %vm163_vm2 = vcmask 261120   ;;  %v162_v40 = vstv %s391_s6  ;;  %s215_s6 = sshll.u32 %s392_s7, 4  ;;  %s216_s6 = int_to_ptr.hbm [resolvable:$true] %s215_s6 }
   0x8   :  { %139 = vperm.xlu1 %241, %v129_v7   ;;  %v30_v9 = vld [vmem:[%s387_s2 + $0x10] sm:$0xff]  ;;  %v128_v12 = vld [vmem:[%s389_s4] sm:$0xff]  ;;  %v36_v13 = vld [vmem:[%s388_s3 + $0x18] sm:$0xff]  ;;  %vm206_vm6 = vcmask 57344  }
   0x9   :  { %v130_v11 = vld [vmem:[%s389_s4 + $0x10] sm:$0xff]  ;;  %v31_v14 = vld [vmem:[%s387_s2 + $0x18] sm:$0xff]  ;;  %v160_v38 = vld [vmem:[%s390_s5] sm:$0x1]  ;;  %s281_s5 = smov [#allocation3]  }
   0xa   :  { %s213_s28 = sshll.u32 %s281_s5, 4  ;;  %s214_s28 = int_to_ptr.vmem [resolvable:$true] %s213_s28 }
   0xd   :  { %227 = vmatmul.msk.f32.gmra.mxu3 %vm38_vm0, %v35_v8 }
   0xe   :  { %232 = vmatmul.msk.f32.gmra.mxu1 %vm83_vm1, %v30_v9 }
   0xf   :  { %230 = vmatmul.msk.f32.vlgmr.msrb.gmra.mxu0 %vm83_vm1, %v28_v10  ;;  %144 = vperm.xlu0 %240, %v130_v11  }
  0x10   :  { %134 = vperm.xlu1 %241, %v128_v12  }
  0x15   :  { %228 = vmatmul.msk.f32.gmra.mxu3 %vm38_vm0, %v36_v13 }
  0x16   :  { %233 = vmatmul.msk.f32.gmra.mxu1 %vm83_vm1, %v31_v14 }
  0x79   :  { %v150_v18 = vpop.permute.xlu0 %149 }
  0x7a   :  { %v140_v21 = vpop.permute.xlu1 %139 }
  0x81   :  { %v145_v24 = vpop.permute.xlu0 %144 }
  0x82   :  { %v135_v32 = vpop.permute.xlu1 %134 }
  0x83   :  { %v119_v15 = vpop.f32.mrf.mxu1 }
  0x84   :  { %v71_v19 = vpop.f32.mrf.mxu0 }
  0x88   :  { %v74_v16 = vpop.f32.mrf.mxu3 }
  0x89   :  { %v120_v27 = vadd.f32 %v119_v15, %v74_v16 }
  0x8b   :  { %v122_v17 = vpop.f32.mrf.mxu1  ;;  %v153_v33 = vadd.f32 %v140_v21, %v120_v27 }
  0x8c   :  { %v116_v25 = vpop.f32.mrf.mxu0 }
  0x8d   :  { %v117_v30 = vadd.f32 %v116_v25, %v71_v19 }
  0x8f   :  { %v152_v34 = vadd.f32 %v135_v32, %v117_v30 }
  0x90   :  { %v77_v20 = vpop.f32.mrf.mxu3 }
  0x91   :  { %v123_v23 = vadd.f32 %v122_v17, %v77_v20 }
  0x93   :  { %v125_v22 = vpop.f32.mrf.mxu1  ;;  %v154_v29 = vadd.f32 %v145_v24, %v123_v23 }
  0x98   :  { %v80_v26 = vpop.f32.mrf.mxu3 }
  0x99   :  { %v126_v28 = vadd.f32 %v125_v22, %v80_v26 }
  0x9b   :  { %v155_v31 = vadd.f32 %v150_v18, %v126_v28 }
  0x9d   :  { %242 = vtanh.f32 %v155_v31 }
  0x9e   :  { %244 = vtanh.f32 %v154_v29 }
  0x9f   :  { %246 = vtanh.f32 %v153_v33 }
  0xa0   :  { %248 = vtanh.f32 %v152_v34 }
  0xa3   :  { %v243_v35 = vpop.eup %242 }
  0xa4   :  { %179 = vmatpush.msra.mxu2 %v243_v35  ;;  %v245_v36 = vpop.eup %244 }
  0xa5   :  { %v247_v37 = vpop.eup %246 }
  0xa6   :  { %180 = vmatpush.msra.mxu2 %v245_v36  ;;  %v249_v39 = vpop.eup %248 }
  0xa8   :  { %181 = vmatpush.msra.mxu2 %v247_v37 }
  0xaa   :  { %182 = vmatpush.msra.mxu2 %v249_v39 }
  0xab   :  { %234 = vmatmul.msk.f32.vlgmr.msra.gmra.mxu2 %vm163_vm2, %v160_v38 }
 0x12e   :  { %v184_v41 = vpop.f32.mrf.mxu2 }
 0x12f   :  { %v185_v42 = vadd.f32 %v184_v41, %v162_v40 }
 0x131   :  { %v235_v43 = vmul.f32 -1.442695, %v185_v42 }
 0x133   :  { %250 = vpow2.f32 %v235_v43 }
 0x139   :  { %v251_v44 = vpop.eup %250 }
 0x13a   :  { %v190_v45 = vadd.f32 1.0, %v251_v44 }
 0x13c   :  { %252 = vrcp.f32 %v190_v45  ;;  %v202_v49 = vand.u32 2147483648, %v190_v45  ;;  %v200_v51 = vand.u32 2147483647, %v190_v45  ;;  %vm196_vm4 = vweird.f32 %v190_v45 }
 0x13e   :  { %v203_v53 = vor.u32 1.1754944e-38, %v202_v49  ;;  %vm201_vm7 = vcmp.eq.f32.partialorder %v200_v51, 8.507059e+37 }
 0x142   :  { %v253_v46 = vpop.eup %252 }
 0x143   :  { %v192_v47 = vmul.f32 %v253_v46, %v190_v45  ;;  %vm197_vm3 = vweird.f32 %v253_v46 }
 0x144   :  { %vm198_vm5 = vmor %vm196_vm4, %vm197_vm3 }
 0x145   :  { %v193_v48 = vsub.f32 1.0, %v192_v47 }
 0x147   :  { %v194_v50 = vmul.f32 %v253_v46, %v193_v48 }
 0x149   :  { %v195_v52 = vadd.f32 %v253_v46, %v194_v50 }
 0x14b   :  { %v199_v54 = vsel %vm198_vm5, %v253_v46, %v195_v52 }
 0x14c   :  { %v204_v55 = vsel %vm201_vm7, %v203_v53, %v199_v54 }
 0x14d   :  { %207 = vst.msk [vmem:[#allocation3] sm:$0x1] %vm206_vm6, %v204_v55 }
 0x14e   :  { %218 = dma.vmem_to_hbm [thread:$0]  %s214_s28, 16, %s216_s6, [#allocation4]  }
 0x14f   :  { %278 = dma.done.wait [#allocation4], 16  }
 0x150   :  { %279 = vsyncadd [#allocation4], 4294967280 }
 0x151   :  { %223 = vsyncpa [#allocation4], 1 }

</bundles_post_ra>
